<compile_context>
chip_gen: v6e
topology: v6e:2x2x1
jax: 0.10.0
libtpu: 0.0.40
codegen_flags: <defaults>
</compile_context>

<pallas_src>
import jax
import jax.numpy as jnp
from jax.experimental import pallas as pl
from jax.experimental.pallas import tpu as pltpu


def resadd_linear_kernel(x_ref, w_ref, b_ref, o_ref):
    """One (TM, TN) output tile of fn(x) + x, with fn = Linear(H, H)."""
    tn = o_ref.shape[-1]
    x = x_ref[...]                                     # (TM, Hp) activations
    y = jnp.dot(x.astype(w_ref.dtype), w_ref[...],     # bf16 MXU inputs
                preferred_element_type=jnp.float32)    # (TM, TN) f32 accum
    if x_ref.shape[-1] == tn:                          # single N block
        res = x
    else:                                              # residual slice of x for this N tile
        start = pl.multiple_of(pl.program_id(1) * tn, tn)
        res = x_ref[:, pl.ds(start, tn)]
    o_ref[...] = (y + b_ref[...] + res).astype(o_ref.dtype)


def _aligned_hidden(h):
    """Lane/MXU-aligned hidden: 256-multiples (v6e/v7x MXU) when large enough,
    128-multiples (one vreg lane width) otherwise."""
    align = 256 if h >= 256 else 128
    return pl.cdiv(h, align) * align


def _vmem_budget():
    """Per-generation usable-VMEM budget: 3/4 of capacity (~48 MiB on v7x's
    64 MiB, ~96 MiB on v5e/v6e's 128 MiB)."""
    try:
        cap = int(pltpu.get_tpu_info().vmem_capacity_bytes)
    except Exception:  # no TPU info available -> assume the smallest (v7x)
        cap = 64 * 1024 * 1024
    return cap, (cap * 3) // 4


def _plan_tiles(m, hp, align, budget):
    """Pick (TM, TN) maximizing tile size within the per-chip VMEM budget.

    Preference 1: whole W resident and single-buffered (constant block index),
    TM as large as possible.  Preference 2: stream W along an N axis
    (double-buffered) with TM still reasonably large.  Footprint includes the
    double-buffered x/out tiles, in-kernel bf16 x copy, f32 matmul staging and
    a 2 MiB margin.
    """
    mp8 = max(8, pl.cdiv(m, 8) * 8)
    tm_cands = sorted({t for t in (1024, 512, 256, 128, 64, 32, 16, 8)
                       if t <= mp8} | ({mp8} if mp8 <= 1024 else set()),
                      reverse=True)
    tn_cands = [t for t in range(hp, 0, -align) if hp % t == 0]

    def footprint(tm, tn, w_bufs):
        x_tiles = 2 * tm * hp * 4       # double-buffered f32 x tiles
        x_bf16 = tm * hp * 2            # in-kernel bf16 cast of the x tile
        o_tiles = 2 * tm * tn * 4       # double-buffered f32 out tiles
        w_res = w_bufs * hp * tn * 2    # bf16 W block(s)
        stage = tm * tn * 4             # f32 matmul result staging
        bias = 2 * tn * 4
        return x_tiles + x_bf16 + o_tiles + w_res + stage + bias + (2 << 20)

    for tm in tm_cands:                          # preference 1: W resident
        if tm < min(256, tm_cands[0]):
            break
        if footprint(tm, hp, 1) <= budget:
            return tm, hp, footprint(tm, hp, 1)
    for tn in tn_cands[1:]:                      # preference 2: N-tiled W
        for tm in tm_cands:
            if tm < min(128, tm_cands[0]):
                break
            if footprint(tm, tn, 2) <= budget:
                return tm, tn, footprint(tm, tn, 2)
    # Fallback: smallest tiles; caller raises vmem_limit to the true footprint.
    # TODO(synk): add a K-reduction grid axis (+ f32 accumulator scratch) for
    # hidden sizes where even one (Hp, align) bf16 W stripe exceeds VMEM.
    tm, tn = tm_cands[-1], tn_cands[-1]
    return tm, tn, footprint(tm, tn, 2)


def _spec(shape, index_map, single_buffered=False):
    """BlockSpec, optionally single-buffered (constant-index W/bias blocks)."""
    if single_buffered:
        try:
            return pl.BlockSpec(shape, index_map, pipeline_mode=pl.Buffered(1))
        except TypeError:  # older jax without pipeline_mode kwarg
            pass
    return pl.BlockSpec(shape, index_map)


def prepare_resadd_params(w, b):
    """One-time param preprocessing, hoisted out of the per-call hot path:
    pad the Linear weight/bias to the aligned hidden size and pre-cast W to
    bf16 (halves its DMA bytes).  Cache and reuse the result across calls."""
    h = w.shape[0]
    hp = _aligned_hidden(h)
    if hp != h:
        w = jnp.pad(w, ((0, hp - h), (0, hp - h)))
        b = jnp.pad(b, (0, hp - h))
    return w.astype(jnp.bfloat16), b.reshape(1, hp).astype(jnp.float32)


@jax.jit
def res_add(x, w_prepared, b_prepared):
    """ResAdd(Linear).forward: out = x @ W + b + x.

    x: (B, S, H); w_prepared: (Hp, Hp) bf16; b_prepared: (1, Hp) f32 (both from
    prepare_resadd_params).  Returns (B, S, H) in x.dtype.
    """
    B, S, H = x.shape
    M = B * S
    Hp = w_prepared.shape[0]
    align = 256 if Hp % 256 == 0 else 128

    vmem_cap, budget = _vmem_budget()
    TM, TN, fp = _plan_tiles(M, Hp, align, budget)
    Mp = pl.cdiv(M, TM) * TM
    n_m, n_n = Mp // TM, Hp // TN
    vmem_limit = int(min(vmem_cap, max(budget, fp + (2 << 20))))

    # Skip padding / the final slice when they are no-ops: each is otherwise a
    # full (M, H) HBM read+write in a separate XLA op.
    pad_m, pad_h = Mp - M, Hp - H
    x2 = x.reshape(M, H)
    if pad_m or pad_h:
        x2 = jnp.pad(x2, ((0, pad_m), (0, pad_h)))

    # Alias output onto x only when safe (single N block: no core can still
    # need to read rows another core already overwrote) and free (padding made
    # x2 a fresh temp, so XLA inserts no defensive copy of the jit parameter).
    aliases = {0: 0} if ((pad_m or pad_h) and n_n == 1) else {}

    out = pl.pallas_call(
        resadd_linear_kernel,
        out_shape=jax.ShapeDtypeStruct((Mp, Hp), x.dtype),
        grid_spec=pltpu.PrefetchScalarGridSpec(
            num_scalar_prefetch=0,
            grid=(n_m, n_n),
            in_specs=[
                _spec((TM, Hp), lambda i, j: (i, 0)),             # x tile (full K)
                _spec((Hp, TN), lambda i, j: (0, j),
                      single_buffered=(n_n == 1)),                # bf16 W stripe
                _spec((1, TN), lambda i, j: (0, j),
                      single_buffered=(n_n == 1)),                # bias stripe
            ],
            out_specs=pl.BlockSpec((TM, TN), lambda i, j: (i, j)),
        ),
        compiler_params=pltpu.CompilerParams(
            dimension_semantics=("parallel", "parallel"),
            vmem_limit_bytes=vmem_limit,
        ),
        input_output_aliases=aliases,
    )(x2, w_prepared, b_prepared)

    if pad_m or pad_h:
        out = out[:M, :H]
    return out.reshape(B, S, H)


if __name__ == "__main__":
    key = jax.random.PRNGKey(0)
    kx, kw, kb = jax.random.split(key, 3)

    B, S, H = 2, 8, 32
    x = jax.random.normal(kx, (B, S, H), dtype=jnp.float32)
    # Deterministic synthetic "Linear" parameters for fn.
    w = jax.random.normal(kw, (H, H), dtype=jnp.float32) * 0.1
    b = jax.random.normal(kb, (H,), dtype=jnp.float32) * 0.1

    # One-time weight/bias prep (hoisted out of the per-call hot path).
    wp, bp = prepare_resadd_params(w, b)
    out = jax.block_until_ready(res_add(x, wp, bp))

    # Pure-JAX reference: fn(x) + x with the same bf16 quantization of the
    # matmul inputs that the MXU path uses (accumulation + residual in f32).
    xq = x.astype(jnp.bfloat16).astype(jnp.float32)
    wq = w.astype(jnp.bfloat16).astype(jnp.float32)
    ref = jnp.einsum("bsh,hk->bsk", xq, wq,
                     precision=jax.lax.Precision.HIGHEST) + b + x

    assert out.shape == ref.shape
    assert out.dtype == ref.dtype
    assert jnp.allclose(out, ref, atol=1e-5, rtol=1e-5)

    print("KERNEL_OK")
</pallas_src>

<mosaic_0001>
module attributes {stable_mosaic.version = 11 : i64} {
  func.func @resadd_linear_kernel(%arg0: i32, %arg1: i32, %arg2: memref<16x128xf32, #tpu.memory_space<vmem>>, %arg3: memref<128x128xbf16, #tpu.memory_space<vmem>>, %arg4: memref<1x128xf32, #tpu.memory_space<vmem>>, %arg5: memref<16x128xf32, #tpu.memory_space<vmem>>) attributes {dimension_semantics = [#tpu.dimension_semantics<parallel>, #tpu.dimension_semantics<parallel>], iteration_bounds = array<i64: 1, 1>, scalar_prefetch = 0 : i64, scratch_operands = 0 : i64, tpu.core_type = #tpu.core_type<tc>, window_params = [{transform_indices = @transform_0, window_bounds = array<i64: 16, 128>}, {pipeline_mode = #tpu.pipeline_mode<synchronous>, transform_indices = @transform_1, window_bounds = array<i64: 128, 128>}, {pipeline_mode = #tpu.pipeline_mode<synchronous>, transform_indices = @transform_2, window_bounds = array<i64: 1, 128>}, {transform_indices = @transform_3, window_bounds = array<i64: 16, 128>}]} {
    %c0 = arith.constant 0 : index
    %c0_0 = arith.constant 0 : index
    %0 = vector.load %arg2[%c0, %c0_0] : memref<16x128xf32, #tpu.memory_space<vmem>>, vector<16x128xf32>
    %1 = arith.truncf %0 : vector<16x128xf32> to vector<16x128xbf16>
    %c0_1 = arith.constant 0 : index
    %c0_2 = arith.constant 0 : index
    %2 = vector.load %arg3[%c0_1, %c0_2] : memref<128x128xbf16, #tpu.memory_space<vmem>>, vector<128x128xbf16>
    %cst = arith.constant dense<0.000000e+00> : vector<16x128xf32>
    %3 = tpu.matmul %1, %2, %cst {dimension_numbers = #tpu.dot_dimension_numbers<[1], [0], [0], [1], [0, 0, 1, 1], [], []>} : vector<16x128xbf16>, vector<128x128xbf16>, vector<16x128xf32> -> vector<16x128xf32>
    %c0_3 = arith.constant 0 : index
    %c0_4 = arith.constant 0 : index
    %4 = vector.load %arg4[%c0_3, %c0_4] : memref<1x128xf32, #tpu.memory_space<vmem>>, vector<1x128xf32>
    %5 = vector.broadcast %4 : vector<1x128xf32> to vector<16x128xf32>
    %6 = arith.addf %3, %5 : vector<16x128xf32>
    %7 = arith.addf %6, %0 : vector<16x128xf32>
    %c0_5 = arith.constant 0 : index
    %c0_6 = arith.constant 0 : index
    %8 = vector.load %arg5[%c0_5, %c0_6] : memref<16x128xf32, #tpu.memory_space<vmem>>, vector<16x128xf32>
    tpu.vector_store %arg5[%c0_5, %c0_6], %7 {strides = array<i32>} : memref<16x128xf32, #tpu.memory_space<vmem>>, vector<16x128xf32>,
    return
  }
  func.func @transform_0(%arg0: i32, %arg1: i32) -> (i32, i32) {
    %c0_i32 = arith.constant 0 : i32
    %c0_i32_0 = arith.constant 0 : i32
    return %arg0, %c0_i32 : i32, i32
  }
  func.func @transform_1(%arg0: i32, %arg1: i32) -> (i32, i32) {
    %c0_i32 = arith.constant 0 : i32
    %c0_i32_0 = arith.constant 0 : i32
    return %c0_i32, %arg1 : i32, i32
  }
  func.func @transform_2(%arg0: i32, %arg1: i32) -> (i32, i32) {
    %c0_i32 = arith.constant 0 : i32
    %c0_i32_0 = arith.constant 0 : i32
    return %c0_i32, %arg1 : i32, i32
  }
  func.func @transform_3(%arg0: i32, %arg1: i32) -> (i32, i32) {
    %c0_i32 = arith.constant 0 : i32
    return %arg0, %arg1 : i32, i32
  }
}

</mosaic_0001>

<bundles_post_ra>
// kernel: res_add.1
= control target key start
LH: loop header
LB: loop body
LE: loop exit
PB: predicated region body
PF: predicated region fallthrough
CT: control target
= control target key end

     0   :  { %8 = vsyncpa [#allocation3], 0  ;;  %s226_s12 = smov [#allocation2]   ;;  %s269_s0 = inlined_call_operand.vmem [shape: f32[16,128], index: 0, kind: input, shape index: {}, may-alias: {0,3}]   ;;  %s270_s1 = inlined_call_operand.hbm [shape: bf16[128,128], index: 1, kind: input, shape index: {}]   ;;  %s271_s2 = inlined_call_operand.vmem [shape: f32[1,128], index: 2, kind: input, shape index: {}]   ;;  %s272_s3 = inlined_call_operand.vmem [shape: f32[16,128], index: 3, kind: output, shape index: {}, may-alias: {0,3}]  }
   0x1   :  { %s16_s13 = sshll.u32 %s226_s12, 4  ;;  %s17_s13 = int_to_ptr.vmem [resolvable:$true] %s16_s13 }
   0x2   :  { %s212_s14 = scalar_lea.vmem %s17_s13, 1024  ;;  %p217_p1 = scmp.lt.s32.totalorder %s17_s13, %s17_s13 }
   0x3   :  { %p213_p0 = scmp.ne.s32.totalorder %s17_s13, %s212_s14  ;;  %p218_p2 = scmp.lt.s32.totalorder %s212_s14, %s212_s14 }
   0x5   :  { %p219_p3 = por %p218_p2, %p217_p1 }
   0x7   :  { %p220_p4 = pnand %p219_p3, %p213_p0 }
   0x9   :  { %223 = shalt.err (!%p220_p4)
}
   0xa   :  { %s227_s15 = smov 64   ;;  %s228_s16 = smov 4  }
   0xb   :  { %22 = dma.hbm_to_vmem [thread:$0]  %s270_s1, 1024, %s17_s13, [#allocation3], %s227_s15, %s227_s15, %s228_s16  }
   0xc   :  { %224 = dma.done.wait [#allocation3], 1024  }
   0xd   :  { %225 = vsyncadd [#allocation3], 4294966272  ;;  %v229_v0 = vmov 0.0   ;;  %vm230_vm0 = vmmov 0   ;;  %v196_v1 = vld [vmem:[#allocation2 + $0x38] sm:$0xff]   ;;  %v197_v2 = vld [vmem:[#allocation2 + $0x30] sm:$0xff]  }
   0xe   :  { %171 = vmatprep.subr.bf16.mxu0 %v229_v0  ;;  %187 = vmatprep.mubr.msk.bf16.mxu0 %vm230_vm0, %v229_v0  ;;  %v198_v3 = vld [vmem:[#allocation2 + $0x28] sm:$0xff]   ;;  %v199_v4 = vld [vmem:[#allocation2 + $0x20] sm:$0xff]   ;;  %v200_v5 = vld [vmem:[#allocation2 + $0x18] sm:$0xff]  }
   0xf   :  { %172 = vmatpush3.bf16.msra.mxu0 %v196_v1  ;;  %v201_v6 = vld [vmem:[#allocation2 + $0x10] sm:$0xff]   ;;  %v202_v7 = vld [vmem:[#allocation2 + $0x8] sm:$0xff]   ;;  %v203_v8 = vld [vmem:[#allocation2] sm:$0xff]  }
  0x10   :  { %173 = vmatprep.subr.bf16.mxu0 %v229_v0  ;;  %v29_v9 = vld [vmem:[%s269_s0] sm:$0xff]  ;;  %v30_v10 = vld [vmem:[%s269_s0 + $0x8] sm:$0xff] }
  0x11   :  { %v31_v11 = vpack.c.bf16 %v30_v10, %v29_v9  ;;  %v153_v12 = vld [vmem:[%s271_s2] ss:$0 sm:$0xff] }
  0x13   :  { %174 = vmatpush3.bf16.msra.mxu0 %v197_v2 }
  0x14   :  { %175 = vmatprep.subr.bf16.mxu0 %v229_v0 }
  0x17   :  { %176 = vmatpush3.bf16.msra.mxu0 %v198_v3 }
  0x18   :  { %177 = vmatprep.subr.bf16.mxu0 %v229_v0 }
  0x1b   :  { %178 = vmatpush3.bf16.msra.mxu0 %v199_v4 }
  0x1c   :  { %179 = vmatprep.subr.bf16.mxu0 %v229_v0 }
  0x1f   :  { %180 = vmatpush3.bf16.msra.mxu0 %v200_v5 }
  0x20   :  { %181 = vmatprep.subr.bf16.mxu0 %v229_v0 }
  0x23   :  { %182 = vmatpush3.bf16.msra.mxu0 %v201_v6 }
  0x24   :  { %183 = vmatprep.subr.bf16.mxu0 %v229_v0 }
  0x27   :  { %184 = vmatpush3.bf16.msra.mxu0 %v202_v7 }
  0x28   :  { %185 = vmatprep.subr.bf16.mxu0 %v229_v0 }
  0x2b   :  { %186 = vmatpush3.bf16.msra.mxu0 %v203_v8 }
  0x2e   :  { %188 = vmatmul.mubr.bf16.vlgmr.msra.gmra.mxu0 %v31_v11 }
  0xee   :  { %v137_v13 = vpop.f32.mrf.mxu0 }
  0xef   :  { %v138_v14 = vadd.f32 %v153_v12, %v137_v13 }
  0xf0   :  { %v189_v15 = vpop.f32.mrf.mxu0 }
  0xf1   :  { %v144_v16 = vadd.f32 %v138_v14, %v29_v9 }
  0xf2   :  { %v140_v17 = vpop.f32.mrf.mxu0 }
  0xf3   :  { %146 = vst [vmem:[%s272_s3] sm:$0xff] %v144_v16  ;;  %v141_v18 = vadd.f32 %v153_v12, %v140_v17 }
  0xf4   :  { %v190_v19 = vpop.f32.mrf.mxu0 }
  0xf5   :  { %v145_v20 = vadd.f32 %v141_v18, %v30_v10 }
  0xf7   :  { %147 = vst [vmem:[%s272_s3 + $0x8] sm:$0xff] %v145_v20 }
  0xf8   :  { %152 = vsyncpa [#allocation3], 1 }

</bundles_post_ra>
